<compile_context>
chip_gen: v5e
topology: v5e:2x2
jax: 0.10.0
libtpu: 0.0.40
codegen_flags: <defaults>
</compile_context>

<pallas_src>
import jax
import jax.numpy as jnp
from jax import lax
from jax.experimental import pallas as pl
from jax.experimental.pallas import tpu as pltpu  # noqa: F401  (TPU backend assumed)

KH = KW = 4      # conv kernel size
STRIDE = 2
PAD = 1
TAPS = KH * KW   # 16
NEG_SLOPE = 0.2
BN_EPS = 1e-5


# ------------------------------------------------------------------ kernel -----

def _encoder_fused_kernel(x_ref, w1_ref, w2_ref, gamma_ref, beta_ref, o_ref):
    """Fused Encoder_ori forward (conv1 + LReLU + conv2 + BN + LReLU).

    Layouts (channel-major):
      x_ref     : (TAPS, C0*KH*KW, N*H2*W2) bf16  layer-1 patches grouped by the
                  layer-2 tap they feed; all-zero columns encode layer-2 padding
      w1_ref    : (TAPS, ndf, C0*KH*KW)     bf16  layer-1 weight, broadcast over taps
      w2_ref    : (C2, TAPS*ndf)            bf16  lane-dense layer-2 weight matrix
      gamma_ref : (C2, 1) f32 ;  beta_ref : (C2, 1) f32   BatchNorm affine
      o_ref     : (C2, N*H2*W2)             f32   channel-major output slab
    """
    # ---- layer 1: one tap-batched MXU matmul (bf16 in, f32 acc) + LeakyReLU ----
    z1 = lax.dot_general(
        w1_ref[...], x_ref[...],
        dimension_numbers=(((2,), (1,)), ((0,), (0,))),   # batch=taps, contract=k
        preferred_element_type=jnp.float32)               # (TAPS, ndf, P)
    y1 = jnp.where(z1 > 0, z1, NEG_SLOPE * z1)            # LeakyReLU(0.2), f32

    # ---- stack the 16 taps into rows.  (TAPS, ndf, P) -> (TAPS*ndf, P) merges
    # a leading dim into the sublane dim at native f32 tile granularity (each
    # (ndf=8, P) slice is one row-tile), so no cross-vreg data shuffling. ----
    t, c, p = y1.shape
    patches2 = y1.reshape(t * c, p).astype(jnp.bfloat16)  # (128, P), rows = (tap, c)

    # ---- layer 2: ONE lane-dense (C2, 128) x (128, P) MXU matmul ----
    z2 = jnp.dot(w2_ref[...], patches2,
                 preferred_element_type=jnp.float32)      # (C2, P)

    # ---- BatchNorm2d: training-mode batch stats, biased variance, two-pass ----
    mean = jnp.mean(z2, axis=1, keepdims=True)
    diff = z2 - mean
    var = jnp.mean(diff * diff, axis=1, keepdims=True)
    y2 = diff * lax.rsqrt(var + BN_EPS)
    y2 = y2 * gamma_ref[...] + beta_ref[...]

    # ---- LeakyReLU + single channel-major store (lane-dense out_spec) ----
    o_ref[...] = jnp.where(y2 > 0, y2, NEG_SLOPE * y2)


def _full_spec(shape):
    return pl.BlockSpec(shape, lambda: (0,) * len(shape))


# ------------------------------------------------------------------ wrapper ----

def _layer2_tap_patches(x_nchw, h1, w1o, h2, w2o):
    """(TAPS, C0*KH*KW, N*H2*W2) layer-1 input patches, grouped by layer-2 tap.

    For layer-2 tap t=(i,j) and output position (n,a,b), column (n,a,b) of slab t
    holds the layer-1 im2col patch at layer-1 position (2a+i-1, 2b+j-1), or zeros
    when that position falls in layer-2's zero padding (conv1 is bias-free, so a
    zero patch yields an exact zero after conv1+LReLU)."""
    n, c0 = x_nchw.shape[0], x_nchw.shape[1]

    # layer-1 im2col, channel-major rows (c0, kh, kw), spatial kept as (N, H1, W1)
    xp = jnp.pad(x_nchw, ((0, 0), (0, 0), (PAD, PAD), (PAD, PAD)))
    taps1 = [xp[:, :, i:i + STRIDE * h1:STRIDE, j:j + STRIDE * w1o:STRIDE]
             for i in range(KH) for j in range(KW)]                # each (N, C0, H1, W1)
    p1 = jnp.stack(taps1, axis=2)                                  # (N, C0, TAPS, H1, W1)
    p1 = jnp.transpose(p1, (1, 2, 0, 3, 4)).reshape(c0 * TAPS, n, h1, w1o)

    # layer-2 im2col over the layer-1 grid: pad by 1 (zero patch-vectors) and take
    # the 16 strided tap views — all static XLA slicing inside jit, no constants.
    p1p = jnp.pad(p1, ((0, 0), (0, 0), (PAD, PAD), (PAD, PAD)))    # (C0*16, N, H1+2, W1+2)
    taps2 = [p1p[:, :, i:i + STRIDE * h2:STRIDE, j:j + STRIDE * w2o:STRIDE]
             for i in range(KH) for j in range(KW)]                # each (C0*16, N, H2, W2)
    xbig = jnp.stack(taps2, axis=0)                                # (TAPS, C0*16, N, H2, W2)
    return xbig.reshape(TAPS, c0 * TAPS, n * h2 * w2o)


@jax.jit
def encoder_ori_forward(x_nchw, w1, w2, gamma, beta):
    """Encoder_ori forward (imageSize=16, n_extra_layers=0).
    x_nchw: (N, nc, 16, 16) -> (N, 2*ndf, 4, 4), NCHW."""
    n, c0, h, w = x_nchw.shape
    ndf = w1.shape[0]
    c2 = w2.shape[0]
    h1, w1o = h // 2, w // 2
    h2, w2o = h1 // 2, w1o // 2
    cols = n * h2 * w2o

    # XLA-side prep (tiny, fully inside jit): tap-grouped patches and bf16 weights.
    xb = _layer2_tap_patches(x_nchw, h1, w1o, h2, w2o).astype(jnp.bfloat16)
    w1mat = w1.reshape(ndf, c0 * TAPS).astype(jnp.bfloat16)          # cols = (c0, kh, kw)
    w1t = jnp.broadcast_to(w1mat[None], (TAPS, ndf, c0 * TAPS))      # batched operand
    # lane-dense (C2, TAPS*ndf): column order (tap, c_in) matches patches2 rows.
    w2mat = jnp.transpose(w2.reshape(c2, ndf, TAPS), (0, 2, 1)).reshape(
        c2, TAPS * ndf).astype(jnp.bfloat16)
    gamma2 = gamma.reshape(c2, 1).astype(jnp.float32)
    beta2 = beta.reshape(c2, 1).astype(jnp.float32)

    flops = 2 * (TAPS * ndf * (c0 * TAPS) * cols + c2 * (TAPS * ndf) * cols)
    bytes_accessed = int((xb.size + w1t.size + w2mat.size) * 2
                         + (gamma2.size + beta2.size + c2 * cols) * 4)

    # Gridless launch: <100 KiB live data.  For large batches: grid over the column
    # axis ("parallel"), BN sums in a cross-tile accumulator finalized with pl.when.
    out2d = pl.pallas_call(
        _encoder_fused_kernel,
        out_shape=jax.ShapeDtypeStruct((c2, cols), jnp.float32),
        in_specs=[_full_spec(xb.shape), _full_spec(w1t.shape),
                  _full_spec(w2mat.shape), _full_spec(gamma2.shape),
                  _full_spec(beta2.shape)],
        out_specs=_full_spec((c2, cols)),
        cost_estimate=pl.CostEstimate(flops=flops, transcendentals=c2,
                                      bytes_accessed=bytes_accessed),
    )(xb, w1t, w2mat, gamma2, beta2)

    # 2 KiB metadata fixup in the wrapper (kernel output is channel-major (C2, N*H*W)).
    return jnp.transpose(out2d.reshape(c2, n, h2, w2o), (1, 0, 2, 3))


# ---------------------------------------------------------------- reference ----

def encoder_ori_reference(x, w1, w2, gamma, beta):
    dn = ('NCHW', 'OIHW', 'NCHW')
    y = lax.conv_general_dilated(x, w1, (2, 2), ((1, 1), (1, 1)), dimension_numbers=dn)
    y = jnp.where(y > 0, y, NEG_SLOPE * y)
    y = lax.conv_general_dilated(y, w2, (2, 2), ((1, 1), (1, 1)), dimension_numbers=dn)
    mean = y.mean(axis=(0, 2, 3), keepdims=True)
    var = ((y - mean) ** 2).mean(axis=(0, 2, 3), keepdims=True)
    y = (y - mean) * lax.rsqrt(var + BN_EPS)
    y = y * gamma.reshape(1, -1, 1, 1) + beta.reshape(1, -1, 1, 1)
    return jnp.where(y > 0, y, NEG_SLOPE * y)


# -------------------------------------------------------------------- main -----

if __name__ == "__main__":
    imageSize, nc, ndf, batch = 16, 4, 8, 2   # nz unused: reference __init__ adds no final conv

    key = jax.random.PRNGKey(0)
    k1, k2, k3, kx = jax.random.split(key, 4)

    # DCGAN-style init: conv ~ N(0, 0.02), BN weight ~ N(1, 0.02), BN bias = 0.
    w1 = 0.02 * jax.random.normal(k1, (ndf, nc, 4, 4), jnp.float32)
    w2 = 0.02 * jax.random.normal(k2, (2 * ndf, ndf, 4, 4), jnp.float32)
    gamma = 1.0 + 0.02 * jax.random.normal(k3, (2 * ndf,), jnp.float32)
    beta = jnp.zeros((2 * ndf,), jnp.float32)

    x = jax.random.normal(kx, (batch, nc, imageSize, imageSize), jnp.float32)

    out = jax.block_until_ready(encoder_ori_forward(x, w1, w2, gamma, beta))
    ref = jax.block_until_ready(encoder_ori_reference(x, w1, w2, gamma, beta))

    assert out.shape == (batch, 2 * ndf, 4, 4), out.shape
    # bf16 MXU operands loosen the tolerance vs. the f32 XLA reference.
    max_err = float(jnp.max(jnp.abs(out - ref)))
    assert jnp.allclose(out, ref, atol=4e-2, rtol=4e-2), max_err

    print("KERNEL_OK")
</pallas_src>

<mosaic_0001>
module attributes {stable_mosaic.version = 11 : i64} {
  func.func @_encoder_fused_kernel(%arg0: memref<16x64x32xbf16, #tpu.memory_space<vmem>>, %arg1: memref<16x8x64xbf16, #tpu.memory_space<vmem>>, %arg2: memref<16x128xbf16, #tpu.memory_space<vmem>>, %arg3: memref<16x1xf32, #tpu.memory_space<vmem>>, %arg4: memref<16x1xf32, #tpu.memory_space<vmem>>, %arg5: memref<16x32xf32, #tpu.memory_space<vmem>>) attributes {dimension_semantics = [], scalar_prefetch = 0 : i64, scratch_operands = 0 : i64, tpu.core_type = #tpu.core_type<tc>} {
    %c0 = arith.constant 0 : index
    %c0_0 = arith.constant 0 : index
    %c0_1 = arith.constant 0 : index
    %0 = vector.load %arg1[%c0, %c0_0, %c0_1] : memref<16x8x64xbf16, #tpu.memory_space<vmem>>, vector<16x8x64xbf16>
    %c0_2 = arith.constant 0 : index
    %c0_3 = arith.constant 0 : index
    %c0_4 = arith.constant 0 : index
    %1 = vector.load %arg0[%c0_2, %c0_3, %c0_4] : memref<16x64x32xbf16, #tpu.memory_space<vmem>>, vector<16x64x32xbf16>
    %cst = arith.constant dense<0.000000e+00> : vector<16x8x32xf32>
    %2 = tpu.matmul %0, %1, %cst {dimension_numbers = #tpu.dot_dimension_numbers<[2], [1], [1], [2], [0, 0, 0, 1, 1, 2], [0], [0]>} : vector<16x8x64xbf16>, vector<16x64x32xbf16>, vector<16x8x32xf32> -> vector<16x8x32xf32>
    %cst_5 = arith.constant 0.000000e+00 : f32
    %3 = vector.broadcast %cst_5 : f32 to vector<16x8x32xf32>
    %4 = arith.cmpf ogt, %2, %3 : vector<16x8x32xf32>
    %cst_6 = arith.constant 2.000000e-01 : f32
    %5 = vector.broadcast %cst_6 : f32 to vector<16x8x32xf32>
    %6 = arith.mulf %5, %2 : vector<16x8x32xf32>
    %7 = arith.select %4, %2, %6 : vector<16x8x32xi1>, vector<16x8x32xf32>
    %8 = vector.shape_cast %7 : vector<16x8x32xf32> to vector<128x32xf32>
    %9 = arith.truncf %8 : vector<128x32xf32> to vector<128x32xbf16>
    %c0_7 = arith.constant 0 : index
    %c0_8 = arith.constant 0 : index
    %10 = vector.load %arg2[%c0_7, %c0_8] : memref<16x128xbf16, #tpu.memory_space<vmem>>, vector<16x128xbf16>
    %cst_9 = arith.constant dense<0.000000e+00> : vector<16x32xf32>
    %11 = tpu.matmul %10, %9, %cst_9 {dimension_numbers = #tpu.dot_dimension_numbers<[1], [0], [0], [1], [0, 0, 1, 1], [], []>} : vector<16x128xbf16>, vector<128x32xbf16>, vector<16x32xf32> -> vector<16x32xf32>
    %cst_10 = arith.constant dense<0.000000e+00> : vector<16xf32>
    %12 = vector.multi_reduction <add>, %11, %cst_10 [1] : vector<16x32xf32> to vector<16xf32>
    %13 = vector.shape_cast %12 : vector<16xf32> to vector<16x1xf32>
    %cst_11 = arith.constant 3.200000e+01 : f32
    %14 = vector.broadcast %cst_11 : f32 to vector<16x1xf32>
    %15 = arith.divf %13, %14 : vector<16x1xf32>
    %16 = vector.broadcast %15 : vector<16x1xf32> to vector<16x32xf32>
    %17 = arith.subf %11, %16 : vector<16x32xf32>
    %18 = arith.mulf %17, %17 : vector<16x32xf32>
    %cst_12 = arith.constant dense<0.000000e+00> : vector<16xf32>
    %19 = vector.multi_reduction <add>, %18, %cst_12 [1] : vector<16x32xf32> to vector<16xf32>
    %20 = vector.shape_cast %19 : vector<16xf32> to vector<16x1xf32>
    %cst_13 = arith.constant 3.200000e+01 : f32
    %21 = vector.broadcast %cst_13 : f32 to vector<16x1xf32>
    %22 = arith.divf %20, %21 : vector<16x1xf32>
    %cst_14 = arith.constant 9.99999974E-6 : f32
    %23 = vector.broadcast %cst_14 : f32 to vector<16x1xf32>
    %24 = arith.addf %22, %23 : vector<16x1xf32>
    %25 = math.rsqrt %24 : vector<16x1xf32>
    %26 = vector.broadcast %25 : vector<16x1xf32> to vector<16x32xf32>
    %27 = arith.mulf %17, %26 : vector<16x32xf32>
    %c0_15 = arith.constant 0 : index
    %c0_16 = arith.constant 0 : index
    %28 = vector.load %arg3[%c0_15, %c0_16] : memref<16x1xf32, #tpu.memory_space<vmem>>, vector<16x1xf32>
    %29 = vector.broadcast %28 : vector<16x1xf32> to vector<16x32xf32>
    %30 = arith.mulf %27, %29 : vector<16x32xf32>
    %c0_17 = arith.constant 0 : index
    %c0_18 = arith.constant 0 : index
    %31 = vector.load %arg4[%c0_17, %c0_18] : memref<16x1xf32, #tpu.memory_space<vmem>>, vector<16x1xf32>
    %32 = vector.broadcast %31 : vector<16x1xf32> to vector<16x32xf32>
    %33 = arith.addf %30, %32 : vector<16x32xf32>
    %cst_19 = arith.constant 0.000000e+00 : f32
    %34 = vector.broadcast %cst_19 : f32 to vector<16x32xf32>
    %35 = arith.cmpf ogt, %33, %34 : vector<16x32xf32>
    %cst_20 = arith.constant 2.000000e-01 : f32
    %36 = vector.broadcast %cst_20 : f32 to vector<16x32xf32>
    %37 = arith.mulf %36, %33 : vector<16x32xf32>
    %38 = arith.select %35, %33, %37 : vector<16x32xi1>, vector<16x32xf32>
    %c0_21 = arith.constant 0 : index
    %c0_22 = arith.constant 0 : index
    %39 = vector.load %arg5[%c0_21, %c0_22] : memref<16x32xf32, #tpu.memory_space<vmem>>, vector<16x32xf32>
    tpu.vector_store %arg5[%c0_21, %c0_22], %38 {strides = array<i32>} : memref<16x32xf32, #tpu.memory_space<vmem>>, vector<16x32xf32>,
    return
  }
}

</mosaic_0001>

<bundles_post_ra>
// kernel: encoder_ori_forward.1
= control target key start
LH: loop header
LB: loop body
LE: loop exit
PB: predicated region body
PF: predicated region fallthrough
CT: control target
= control target key end

     0   :  { %vm189_vm0 = vcmask 523264   ;;  %s1666_s0 = inlined_call_operand.vmem [shape: bf16[16,64,32], index: 0, kind: input, shape index: {}]   ;;  %s1667_s1 = inlined_call_operand.vmem [shape: bf16[16,8,64], index: 1, kind: input, shape index: {}]   ;;  %s1668_s2 = inlined_call_operand.vmem [shape: bf16[16,128], index: 2, kind: input, shape index: {}]   ;;  %s1669_s4 = inlined_call_operand.vmem [shape: f32[16,1], index: 4, kind: input, shape index: {}]   ;;  %s1670_s3 = inlined_call_operand.vmem [shape: f32[16,1], index: 3, kind: input, shape index: {}]   ;;  %s1671_s5 = inlined_call_operand.vmem [shape: f32[16,32], index: 5, kind: output, shape index: {}]  }
   0x1   :  { %v1255_v0 = vld [vmem:[%s1666_s0 + $0x18] sm:$0xff]  ;;  %v1254_v3 = vld [vmem:[%s1666_s0 + $0x10] sm:$0xff]  ;;  %v1253_v6 = vld [vmem:[%s1666_s0 + $0x8] sm:$0xff] }
   0x2   :  { %v1263_v1 = vld [vmem:[%s1666_s0 + $0x58] sm:$0xff]  ;;  %197 = vmatpush.bf16.msra.mxu1 %v1255_v0  ;;  %v1262_v4 = vld [vmem:[%s1666_s0 + $0x50] sm:$0xff]  ;;  %v1261_v7 = vld [vmem:[%s1666_s0 + $0x48] sm:$0xff] }
   0x3   :  { %v1267_v2 = vld [vmem:[%s1666_s0 + $0x78] sm:$0xff]  ;;  %277 = vmatpush.bf16.msra.mxu2 %v1263_v1  ;;  %v1266_v5 = vld [vmem:[%s1666_s0 + $0x70] sm:$0xff]  ;;  %v1265_v8 = vld [vmem:[%s1666_s0 + $0x68] sm:$0xff] }
   0x4   :  { %317 = vmatpush.bf16.msra.mxu3 %v1267_v2  ;;  %v1271_v9 = vld [vmem:[%s1666_s0 + $0x98] sm:$0xff]  ;;  %v1270_v10 = vld [vmem:[%s1666_s0 + $0x90] sm:$0xff]  ;;  %v1252_v11 = vld [vmem:[%s1666_s0] sm:$0xff] }
   0x5   :  { %357 = vmatpush.bf16.msra.mxu0 %v1271_v9  ;;  %v1260_v12 = vld [vmem:[%s1666_s0 + $0x40] sm:$0xff]  ;;  %v1259_v14 = vld [vmem:[%s1666_s0 + $0x38] sm:$0xff]  ;;  %v23_v18 = vld [vmem:[%s1667_s1 + $0x8] sm:$0xf] }
   0x6   :  { %198 = vmatpush.bf16.msra.mxu1 %v1254_v3  ;;  %v1264_v13 = vld [vmem:[%s1666_s0 + $0x60] sm:$0xff]  ;;  %v1279_v15 = vld [vmem:[%s1666_s0 + $0xd8] sm:$0xff]  ;;  %v1269_v19 = vld [vmem:[%s1666_s0 + $0x88] sm:$0xff] }
   0x7   :  { %278 = vmatpush.bf16.msra.mxu2 %v1262_v4  ;;  %v1283_v16 = vld [vmem:[%s1666_s0 + $0xf8] sm:$0xff]  ;;  %v21_v17 = vld [vmem:[%s1667_s1] sm:$0xf]  ;;  %v24_v20 = vld [vmem:[%s1667_s1 + $0xc] sm:$0xf] }
   0x8   :  { %318 = vmatpush.bf16.msra.mxu3 %v1266_v5  ;;  %v1258_v21 = vld [vmem:[%s1666_s0 + $0x30] sm:$0xff]  ;;  %v1268_v24 = vld [vmem:[%s1666_s0 + $0x80] sm:$0xff]  ;;  %v1257_v25 = vld [vmem:[%s1666_s0 + $0x28] sm:$0xff] }
   0x9   :  { %358 = vmatpush.bf16.msra.mxu0 %v1270_v10  ;;  %v1278_v22 = vld [vmem:[%s1666_s0 + $0xd0] sm:$0xff]  ;;  %v1287_v26 = vld [vmem:[%s1666_s0 + $0x118] sm:$0xff]  ;;  %v1277_v27 = vld [vmem:[%s1666_s0 + $0xc8] sm:$0xff] }
   0xa   :  { %199 = vmatpush.bf16.msra.mxu1 %v1253_v6  ;;  %v1282_v23 = vld [vmem:[%s1666_s0 + $0xf0] sm:$0xff]  ;;  %v1281_v28 = vld [vmem:[%s1666_s0 + $0xe8] sm:$0xff]  ;;  %v1256_v30 = vld [vmem:[%s1666_s0 + $0x20] sm:$0xff] }
   0xb   :  { %279 = vmatpush.bf16.msra.mxu2 %v1261_v7  ;;  %v25_v29 = vld [vmem:[%s1667_s1 + $0x10] sm:$0xf]  ;;  %v1276_v32 = vld [vmem:[%s1666_s0 + $0xc0] sm:$0xff]  ;;  %v1275_v34 = vld [vmem:[%s1666_s0 + $0xb8] sm:$0xff] }
   0xc   :  { %319 = vmatpush.bf16.msra.mxu3 %v1265_v8  ;;  %v1286_v31 = vld [vmem:[%s1666_s0 + $0x110] sm:$0xff]  ;;  %v1280_v33 = vld [vmem:[%s1666_s0 + $0xe0] sm:$0xff]  ;;  %v1295_v35 = vld [vmem:[%s1666_s0 + $0x158] sm:$0xff] }
   0xd   :  { %359 = vmatpush.bf16.msra.mxu0 %v1269_v19  ;;  %v1299_v36 = vld [vmem:[%s1666_s0 + $0x178] sm:$0xff]  ;;  %v1285_v37 = vld [vmem:[%s1666_s0 + $0x108] sm:$0xff]  ;;  %v22_v38 = vld [vmem:[%s1667_s1 + $0x4] sm:$0xf] }
   0xe   :  { %200 = vmatpush.bf16.msra.mxu1 %v1252_v11  ;;  %v27_v39 = vld [vmem:[%s1667_s1 + $0x18] sm:$0xf]  ;;  %v1274_v40 = vld [vmem:[%s1666_s0 + $0xb0] sm:$0xff]  ;;  %v28_v41 = vld [vmem:[%s1667_s1 + $0x1c] sm:$0xf] }
   0xf   :  { %280 = vmatpush.bf16.msra.mxu2 %v1260_v12  ;;  %v1294_v42 = vld [vmem:[%s1666_s0 + $0x150] sm:$0xff]  ;;  %v1284_v44 = vld [vmem:[%s1666_s0 + $0x100] sm:$0xff]  ;;  %v1303_v45 = vld [vmem:[%s1666_s0 + $0x198] sm:$0xff] }
  0x10   :  { %320 = vmatpush.bf16.msra.mxu3 %v1264_v13  ;;  %v1298_v43 = vld [vmem:[%s1666_s0 + $0x170] sm:$0xff]  ;;  %v1273_v46 = vld [vmem:[%s1666_s0 + $0xa8] sm:$0xff]  ;;  %v1272_v49 = vld [vmem:[%s1666_s0 + $0xa0] sm:$0xff] }
  0x11   :  { %992 = vmatmul.msk.bf16.vlgmr.msra.gmra.mxu1 %vm189_vm0, %v21_v17  ;;  %360 = vmatpush.bf16.msra.mxu0 %v1268_v24  ;;  %v1293_v47 = vld [vmem:[%s1666_s0 + $0x148] sm:$0xff]  ;;  %v29_v50 = vld [vmem:[%s1667_s1 + $0x20] sm:$0xf]  ;;  %v1302_v51 = vld [vmem:[%s1666_s0 + $0x190] sm:$0xff] }
  0x12   :  { %237 = vmatpush.bf16.msrb.mxu1 %v1259_v14  ;;  %1026 = vmatmul.msk.bf16.vlgmr.msra.gmra.mxu2 %vm189_vm0, %v23_v18  ;;  %v1297_v48 = vld [vmem:[%s1666_s0 + $0x168] sm:$0xff]  ;;  %v1292_v52 = vld [vmem:[%s1666_s0 + $0x140] sm:$0xff]  ;;  %v1291_v54 = vld [vmem:[%s1666_s0 + $0x138] sm:$0xff] }
  0x13   :  { %437 = vmatpush.bf16.msrb.mxu2 %v1279_v15  ;;  %1043 = vmatmul.msk.bf16.vlgmr.msra.gmra.mxu3 %vm189_vm0, %v24_v20  ;;  %v1296_v53 = vld [vmem:[%s1666_s0 + $0x160] sm:$0xff]  ;;  %v1311_v55 = vld [vmem:[%s1666_s0 + $0x1d8] sm:$0xff]  ;;  %v1301_v57 = vld [vmem:[%s1666_s0 + $0x188] sm:$0xff] }
  0x14   :  { %477 = vmatpush.bf16.msrb.mxu3 %v1283_v16  ;;  %1060 = vmatmul.msk.bf16.vlgmr.msra.gmra.mxu0 %vm189_vm0, %v25_v29  ;;  %v1315_v56 = vld [vmem:[%s1666_s0 + $0x1f8] sm:$0xff]  ;;  %v1290_v58 = vld [vmem:[%s1666_s0 + $0x130] sm:$0xff]  ;;  %v31_v61 = vld [vmem:[%s1667_s1 + $0x28] sm:$0xf] }
  0x15   :  { %517 = vmatpush.bf16.msrb.mxu0 %v1287_v26  ;;  %v1310_v59 = vld [vmem:[%s1666_s0 + $0x1d0] sm:$0xff]  ;;  %v1300_v62 = vld [vmem:[%s1666_s0 + $0x180] sm:$0xff]  ;;  %v32_v63 = vld [vmem:[%s1667_s1 + $0x2c] sm:$0xf] }
  0x16   :  { %238 = vmatpush.bf16.msrb.mxu1 %v1258_v21  ;;  %v26_v60 = vld [vmem:[%s1667_s1 + $0x14] sm:$0xf]  ;;  %v1289_v1 = vld [vmem:[%s1666_s0 + $0x128] sm:$0xff]  ;;  %v1288_v4 = vld [vmem:[%s1666_s0 + $0x120] sm:$0xff] }
  0x17   :  { %438 = vmatpush.bf16.msrb.mxu2 %v1278_v22  ;;  %v1314_v0 = vld [vmem:[%s1666_s0 + $0x1f0] sm:$0xff]  ;;  %v1309_v2 = vld [vmem:[%s1666_s0 + $0x1c8] sm:$0xff]  ;;  %v1308_v5 = vld [vmem:[%s1666_s0 + $0x1c0] sm:$0xff] }
  0x18   :  { %478 = vmatpush.bf16.msrb.mxu3 %v1282_v23  ;;  %v1313_v3 = vld [vmem:[%s1666_s0 + $0x1e8] sm:$0xff]  ;;  %v1307_v6 = vld [vmem:[%s1666_s0 + $0x1b8] sm:$0xff]  ;;  %v33_v7 = vld [vmem:[%s1667_s1 + $0x30] sm:$0xf] }
  0x19   :  { %518 = vmatpush.bf16.msrb.mxu0 %v1286_v31  ;;  %v1312_v8 = vld [vmem:[%s1666_s0 + $0x1e0] sm:$0xff]  ;;  %v1306_v9 = vld [vmem:[%s1666_s0 + $0x1b0] sm:$0xff]  ;;  %v35_v11 = vld [vmem:[%s1667_s1 + $0x38] sm:$0xf] }
  0x1a   :  { %239 = vmatpush.bf16.msrb.mxu1 %v1257_v25  ;;  %v30_v10 = vld [vmem:[%s1667_s1 + $0x24] sm:$0xf]  ;;  %v1305_v12 = vld [vmem:[%s1666_s0 + $0x1a8] sm:$0xff]  ;;  %v36_v13 = vld [vmem:[%s1667_s1 + $0x3c] sm:$0xf] }
  0x1b   :  { %439 = vmatpush.bf16.msrb.mxu2 %v1277_v27  ;;  %v1304_v14 = vld [vmem:[%s1666_s0 + $0x1a0] sm:$0xff]  ;;  %v34_v15 = vld [vmem:[%s1667_s1 + $0x34] sm:$0xf] }
  0x1c   :  { %479 = vmatpush.bf16.msrb.mxu3 %v1281_v28 }
  0x1d   :  { %519 = vmatpush.bf16.msrb.mxu0 %v1285_v37 }
  0x1e   :  { %240 = vmatpush.bf16.msrb.mxu1 %v1256_v30 }
  0x1f   :  { %440 = vmatpush.bf16.msrb.mxu2 %v1276_v32 }
  0x20   :  { %480 = vmatpush.bf16.msrb.mxu3 %v1280_v33 }
  0x21   :  { %1009 = vmatmul.msk.bf16.vlgmr.msrb.gmra.mxu1 %vm189_vm0, %v22_v38  ;;  %520 = vmatpush.bf16.msrb.mxu0 %v1284_v44 }
  0x22   :  { %397 = vmatpush.bf16.msra.mxu1 %v1275_v34  ;;  %1094 = vmatmul.msk.bf16.vlgmr.msrb.gmra.mxu2 %vm189_vm0, %v27_v39 }
  0x23   :  { %597 = vmatpush.bf16.msra.mxu2 %v1295_v35  ;;  %1111 = vmatmul.msk.bf16.vlgmr.msrb.gmra.mxu3 %vm189_vm0, %v28_v41 }
  0x24   :  { %637 = vmatpush.bf16.msra.mxu3 %v1299_v36  ;;  %1128 = vmatmul.msk.bf16.vlgmr.msrb.gmra.mxu0 %vm189_vm0, %v29_v50 }
  0x25   :  { %677 = vmatpush.bf16.msra.mxu0 %v1303_v45 }
  0x26   :  { %398 = vmatpush.bf16.msra.mxu1 %v1274_v40 }
  0x27   :  { %598 = vmatpush.bf16.msra.mxu2 %v1294_v42 }
  0x28   :  { %638 = vmatpush.bf16.msra.mxu3 %v1298_v43 }
  0x29   :  { %678 = vmatpush.bf16.msra.mxu0 %v1302_v51 }
  0x2a   :  { %399 = vmatpush.bf16.msra.mxu1 %v1273_v46 }
  0x2b   :  { %599 = vmatpush.bf16.msra.mxu2 %v1293_v47 }
  0x2c   :  { %639 = vmatpush.bf16.msra.mxu3 %v1297_v48 }
  0x2d   :  { %679 = vmatpush.bf16.msra.mxu0 %v1301_v57 }
  0x2e   :  { %400 = vmatpush.bf16.msra.mxu1 %v1272_v49 }
  0x2f   :  { %600 = vmatpush.bf16.msra.mxu2 %v1292_v52 }
  0x30   :  { %640 = vmatpush.bf16.msra.mxu3 %v1296_v53 }
  0x31   :  { %1077 = vmatmul.msk.bf16.vlgmr.msra.gmra.mxu1 %vm189_vm0, %v26_v60  ;;  %680 = vmatpush.bf16.msra.mxu0 %v1300_v62 }
  0x32   :  { %557 = vmatpush.bf16.msrb.mxu1 %v1291_v54  ;;  %1162 = vmatmul.msk.bf16.vlgmr.msra.gmra.mxu2 %vm189_vm0, %v31_v61 }
  0x33   :  { %757 = vmatpush.bf16.msrb.mxu2 %v1311_v55  ;;  %1179 = vmatmul.msk.bf16.vlgmr.msra.gmra.mxu3 %vm189_vm0, %v32_v63 }
  0x34   :  { %797 = vmatpush.bf16.msrb.mxu3 %v1315_v56  ;;  %1196 = vmatmul.msk.bf16.vlgmr.msra.gmra.mxu0 %vm189_vm0, %v33_v7 }
  0x36   :  { %558 = vmatpush.bf16.msrb.mxu1 %v1290_v58 }
  0x37   :  { %758 = vmatpush.bf16.msrb.mxu2 %v1310_v59 }
  0x38   :  { %798 = vmatpush.bf16.msrb.mxu3 %v1314_v0 }
  0x3a   :  { %559 = vmatpush.bf16.msrb.mxu1 %v1289_v1 }
  0x3b   :  { %759 = vmatpush.bf16.msrb.mxu2 %v1309_v2 }
  0x3c   :  { %799 = vmatpush.bf16.msrb.mxu3 %v1313_v3 }
  0x3e   :  { %560 = vmatpush.bf16.msrb.mxu1 %v1288_v4 }
  0x3f   :  { %760 = vmatpush.bf16.msrb.mxu2 %v1308_v5 }
  0x40   :  { %800 = vmatpush.bf16.msrb.mxu3 %v1312_v8 }
  0x41   :  { %1145 = vmatmul.msk.bf16.vlgmr.msrb.gmra.mxu1 %vm189_vm0, %v30_v10 }
  0x42   :  { %717 = vmatpush.bf16.msra.mxu1 %v1307_v6  ;;  %1230 = vmatmul.msk.bf16.vlgmr.msrb.gmra.mxu2 %vm189_vm0, %v35_v11 }
  0x43   :  { %1247 = vmatmul.msk.bf16.vlgmr.msrb.gmra.mxu3 %vm189_vm0, %v36_v13 }
  0x46   :  { %718 = vmatpush.bf16.msra.mxu1 %v1306_v9 }
  0x4a   :  { %719 = vmatpush.bf16.msra.mxu1 %v1305_v12 }
  0x4e   :  { %720 = vmatpush.bf16.msra.mxu1 %v1304_v14 }
  0x51   :  { %1213 = vmatmul.msk.bf16.vlgmr.msra.gmra.mxu1 %vm189_vm0, %v34_v15 }
  0x8e   :  { %v202_v16 = vpop.f32.mrf.mxu1 }
  0x8f   :  { %v822_v27 = vmul.f32 0.2, %v202_v16  ;;  %vm806_vm3 = vcmp.gt.f32.partialorder %v202_v16, 0.0 }
  0x91   :  { %v1616_v22 = vpop.f32.mrf.mxu0  ;;  %v1624_v32 = vsel %vm806_vm3, %v202_v16, %v822_v27 }
  0x92   :  { %vm810_vm0 = vcmp.gt.f32.partialorder %v1616_v22, 0.0 }
  0x95   :  { %v282_v17 = vpop.f32.mrf.mxu2 }
  0x96   :  { %vm808_vm1 = vcmp.gt.f32.partialorder %v282_v17, 0.0  ;;  %v824_v18 = vmul.f32 0.2, %v282_v17  ;;  %v322_v19 = vpop.f32.mrf.mxu3  ;;  %v204_v21 = vpop.f32.mrf.mxu1 }
  0x97   :  { %vm809_vm2 = vcmp.gt.f32.partialorder %v322_v19, 0.0  ;;  %v825_v20 = vmul.f32 0.2, %v322_v19 }
  0x98   :  { %v1618_v23 = vsel %vm808_vm1, %v282_v17, %v824_v18  ;;  %vm884_vm1 = vcmask 261120  }
  0x99   :  { %v1620_v24 = vsel %vm809_vm2, %v322_v19, %v825_v20  ;;  %v364_v30 = vpop.f32.mrf.mxu0  ;;  %v826_v19 = vmul.f32 0.2, %v1616_v22 }
  0x9a   :  { %v855_v25 = vpack.c.bf16 %v1620_v24, %v1618_v23  ;;  %v1328_v23 = vmov 32.0  }
  0x9b   :  { %1322 = vrcp.f32 %v1328_v23 }
  0x9d   :  { %v284_v26 = vpop.f32.mrf.mxu2 }
  0x9e   :  { %v324_v28 = vpop.f32.mrf.mxu3  ;;  %v242_v29 = vpop.f32.mrf.mxu1  ;;  %v842_v26 = vsel %vm810_vm0, %v1616_v22, %v826_v19 }
  0x9f   :  { %vm807_vm4 = vcmp.gt.f32.partialorder %v242_v29, 0.0  ;;  %v823_v31 = vmul.f32 0.2, %v242_v29  ;;  %v1316_v28 = vld [vmem:[%s1668_s2] sm:$0xff] }
  0xa1   :  { %v1626_v33 = vsel %vm807_vm4, %v242_v29, %v823_v31  ;;  %v522_v38 = vpop.f32.mrf.mxu0  ;;  %v1323_v24 = vpop.eup %1322 }
  0xa2   :  { %v854_v34 = vpack.c.bf16 %v1626_v33, %v1624_v32  ;;  %v830_v8 = vmul.f32 0.2, %v522_v38  ;;  %vm814_vm12 = vcmp.gt.f32.partialorder %v522_v38, 0.0  ;;  %v1329_v32 = vmov 0  }
  0xa3   :  { %1320 = vset.pattern.permute.xlu0 %v1329_v32  ;;  %1321 = vset.pattern.permute.xlu1 %v1329_v32  ;;  %vm896_vm2 = vweird.f32 %v1323_v24 }
  0xa4   :  { %v846_v14 = vsel %vm814_vm12, %v522_v38, %v830_v8  ;;  %1319 = vset.pattern.permute.xlu2 %v1329_v32 }
  0xa5   :  { %v442_v35 = vpop.f32.mrf.mxu2 }
  0xa6   :  { %v482_v36 = vpop.f32.mrf.mxu3  ;;  %v244_v37 = vpop.f32.mrf.mxu1  ;;  %v828_v11 = vmul.f32 0.2, %v442_v35  ;;  %vm812_vm13 = vcmp.gt.f32.partialorder %v442_v35, 0.0 }
  0xa7   :  { %v829_v12 = vmul.f32 0.2, %v482_v36  ;;  %vm813_vm14 = vcmp.gt.f32.partialorder %v482_v36, 0.0 }
  0xa8   :  { %v844_v16 = vsel %vm812_vm13, %v442_v35, %v828_v11  ;;  %v950_v35 = vld [vmem:[%s1669_s4] sm:$0xff] }
  0xa9   :  { %v524_v42 = vpop.f32.mrf.mxu0  ;;  %v845_v17 = vsel %vm813_vm14, %v482_v36, %v829_v12 }
  0xaa   :  { %v857_v20 = vpack.c.bf16 %v845_v17, %v844_v16 }
  0xad   :  { %v444_v39 = vpop.f32.mrf.mxu2 }
  0xae   :  { %v484_v40 = vpop.f32.mrf.mxu3  ;;  %v402_v41 = vpop.f32.mrf.mxu1 }
  0xaf   :  { %v827_v18 = vmul.f32 0.2, %v402_v41  ;;  %vm811_vm15 = vcmp.gt.f32.partialorder %v402_v41, 0.0 }
  0xb1   :  { %v682_v46 = vpop.f32.mrf.mxu0  ;;  %v843_v21 = vsel %vm811_vm15, %v402_v41, %v827_v18 }
  0xb2   :  { %v834_v60 = vmul.f32 0.2, %v682_v46  ;;  %vm818_vm7 = vcmp.gt.f32.partialorder %v682_v46, 0.0  ;;  %v856_v27 = vpack.c.bf16 %v843_v21, %v842_v26 }
  0xb4   :  { %v850_v2 = vsel %vm818_vm7, %v682_v46, %v834_v60 }
  0xb5   :  { %v602_v43 = vpop.f32.mrf.mxu2 }
  0xb6   :  { %v642_v44 = vpop.f32.mrf.mxu3  ;;  %v404_v45 = vpop.f32.mrf.mxu1  ;;  %v832_v62 = vmul.f32 0.2, %v602_v43  ;;  %vm816_vm9 = vcmp.gt.f32.partialorder %v602_v43, 0.0 }
  0xb7   :  { %v833_v0 = vmul.f32 0.2, %v642_v44  ;;  %vm817_vm10 = vcmp.gt.f32.partialorder %v642_v44, 0.0  ;;  %v936_v45 = vld [vmem:[%s1670_s3] sm:$0xff] }
  0xb8   :  { %v848_v5 = vsel %vm816_vm9, %v602_v43, %v832_v62  ;;  %940 = vperm.xlu2 %1319, %v936_v45  }
  0xb9   :  { %v684_v50 = vpop.f32.mrf.mxu0  ;;  %v849_v6 = vsel %vm817_vm10, %v642_v44, %v833_v0 }
  0xba   :  { %v859_v10 = vpack.c.bf16 %v849_v6, %v848_v5  ;;  %v951_v50 = vld [vmem:[%s1669_s4 + $0x8] sm:$0xff] }
  0xbd   :  { %v604_v47 = vpop.f32.mrf.mxu2 }
  0xbe   :  { %v644_v48 = vpop.f32.mrf.mxu3  ;;  %v562_v49 = vpop.f32.mrf.mxu1 }
  0xbf   :  { %v831_v7 = vmul.f32 0.2, %v562_v49  ;;  %vm815_vm11 = vcmp.gt.f32.partialorder %v562_v49, 0.0 }
  0xc1   :  { %v847_v13 = vsel %vm815_vm11, %v562_v49, %v831_v7  ;;  %v937_v49 = vld [vmem:[%s1670_s3 + $0x8] sm:$0xff] }
  0xc2   :  { %v858_v15 = vpack.c.bf16 %v847_v13, %v846_v14  ;;  %945 = vperm.xlu2 %1319, %v937_v49  }
  0xc5   :  { %v762_v51 = vpop.f32.mrf.mxu2 }
  0xc6   :  { %vm820_vm5 = vcmp.gt.f32.partialorder %v762_v51, 0.0  ;;  %v836_v52 = vmul.f32 0.2, %v762_v51  ;;  %v802_v53 = vpop.f32.mrf.mxu3  ;;  %v564_v55 = vpop.f32.mrf.mxu1 }
  0xc7   :  { %vm821_vm6 = vcmp.gt.f32.partialorder %v802_v53, 0.0  ;;  %v837_v54 = vmul.f32 0.2, %v802_v53 }
  0xc8   :  { %v852_v56 = vsel %vm820_vm5, %v762_v51, %v836_v52 }
  0xc9   :  { %v853_v57 = vsel %vm821_vm6, %v802_v53, %v837_v54 }
  0xca   :  { %v861_v58 = vpack.c.bf16 %v853_v57, %v852_v56 }
  0xcc   :  { %870 = vmatpush.bf16.msrb.mxu0 %v861_v58 }
  0xcd   :  { %v764_v59 = vpop.f32.mrf.mxu2 }
  0xce   :  { %v804_v61 = vpop.f32.mrf.mxu3  ;;  %v722_v63 = vpop.f32.mrf.mxu1 }
  0xcf   :  { %vm819_vm8 = vcmp.gt.f32.partialorder %v722_v63, 0.0  ;;  %v835_v1 = vmul.f32 0.2, %v722_v63 }
  0xd1   :  { %v851_v3 = vsel %vm819_vm8, %v722_v63, %v835_v1 }
  0xd2   :  { %v860_v4 = vpack.c.bf16 %v851_v3, %v850_v2 }
  0xd4   :  { %871 = vmatpush.bf16.msrb.mxu0 %v860_v4 }
  0xd6   :  { %v724_v9 = vpop.f32.mrf.mxu1 }
  0xd8   :  { %872 = vmatpush.bf16.msrb.mxu0 %v859_v10 }
  0xdc   :  { %873 = vmatpush.bf16.msrb.mxu0 %v858_v15 }
  0xe0   :  { %874 = vmatpush.bf16.msrb.mxu0 %v857_v20 }
  0xe4   :  { %875 = vmatpush.bf16.msrb.mxu0 %v856_v27 }
  0xe8   :  { %876 = vmatpush.bf16.msrb.mxu0 %v855_v25  ;;  %v892_v25 = vmul.f32 32.0, %v1323_v24 }
  0xea   :  { %v893_v33 = vsub.f32 1.0, %v892_v25 }
  0xec   :  { %877 = vmatpush.bf16.msrb.mxu0 %v854_v34  ;;  %v894_v34 = vmul.f32 %v1323_v24, %v893_v33 }
  0xee   :  { %v895_v36 = vadd.f32 %v1323_v24, %v894_v34 }
  0xef   :  { %878 = vmatmul.bf16.vlgmr.msrb.gmra.mxu0 %v1316_v28 }
  0xf0   :  { %v897_v37 = vsel %vm896_vm2, %v1323_v24, %v895_v36 }
 0x112   :  { %v941_v2 = vpop.permute.xlu2 %940 }
 0x11c   :  { %v946_v15 = vpop.permute.xlu2 %945 }
 0x16c   :  { %v879_v29 = vpop.f32.mrf.mxu0 }
 0x16d   :  { %v885_v30 = vsel %vm884_vm1, %v879_v29, 0.0 }
 0x16e   :  { %886 = vadd.xlane.f32.xlu0 %v885_v30 }
 0x174   :  { %v881_v22 = vpop.f32.mrf.mxu0 }
 0x175   :  { %v888_v31 = vsel %vm884_vm1, %v881_v22, 0.0 }
 0x176   :  { %889 = vadd.xlane.f32.xlu0 %v888_v31 }
 0x18a   :  { %954 = vperm.xlu0 %1320, %v950_v35  }
 0x1e1   :  { %v887_v38 = vpop.xlane.xlu0 %886 }
 0x1e2   :  { %v898_v39 = vmul.f32 %v897_v37, %v887_v38 }
 0x1e4   :  { %v900_v40 = vsub.f32 %v879_v29, %v898_v39 }
 0x1e6   :  { %v902_v41 = vmul.f32 %v900_v40, %v900_v40 }
 0x1e8   :  { %v904_v42 = vsel %vm884_vm1, %v902_v41, 0.0 }
 0x1e9   :  { %905 = vadd.xlane.f32.xlu1 %v904_v42  ;;  %v890_v43 = vpop.xlane.xlu0 %889 }
 0x1ea   :  { %v899_v44 = vmul.f32 %v897_v37, %v890_v43 }
 0x1ec   :  { %v901_v46 = vsub.f32 %v881_v22, %v899_v44 }
 0x1ee   :  { %v903_v47 = vmul.f32 %v901_v46, %v901_v46 }
 0x1f0   :  { %v907_v48 = vsel %vm884_vm1, %v903_v47, 0.0 }
 0x1f1   :  { %908 = vadd.xlane.f32.xlu1 %v907_v48 }
 0x1fc   :  { %v955_v6 = vpop.permute.xlu0 %954 }
 0x20a   :  { %959 = vperm.xlu1 %1321, %v951_v50  }
 0x25c   :  { %v906_v51 = vpop.xlane.xlu1 %905 }
 0x25d   :  { %v910_v52 = vmul.f32 %v906_v51, %v897_v37 }
 0x25f   :  { %v912_v53 = vadd.f32 1e-05, %v910_v52 }
 0x261   :  { %1324 = vrsqrt.f32 %v912_v53  ;;  %vm920_vm4 = vweird.f32 %v912_v53 }
 0x264   :  { %v909_v54 = vpop.xlane.xlu1 %908 }
 0x265   :  { %v911_v55 = vmul.f32 %v909_v54, %v897_v37 }
 0x267   :  { %v1325_v56 = vpop.eup %1324  ;;  %v913_v57 = vadd.f32 1e-05, %v911_v55 }
 0x268   :  { %v915_v58 = vmul.f32 %v1325_v56, %v912_v53  ;;  %vm921_vm3 = vweird.f32 %v1325_v56 }
 0x269   :  { %1326 = vrsqrt.f32 %v913_v57  ;;  %vm922_vm5 = vmor %vm920_vm4, %vm921_vm3  ;;  %vm930_vm7 = vweird.f32 %v913_v57 }
 0x26a   :  { %v916_v59 = vmul.f32 %v1325_v56, %v915_v58 }
 0x26c   :  { %v917_v60 = vmul.f32 0.5, %v916_v59 }
 0x26e   :  { %v918_v61 = vsub.f32 1.5, %v917_v60 }
 0x26f   :  { %v1327_v62 = vpop.eup %1326 }
 0x270   :  { %v925_v63 = vmul.f32 %v1327_v62, %v913_v57  ;;  %v919_v0 = vmul.f32 %v1325_v56, %v918_v61  ;;  %vm931_vm6 = vweird.f32 %v1327_v62 }
 0x271   :  { %vm932_vm8 = vmor %vm930_vm7, %vm931_vm6 }
 0x272   :  { %v926_v1 = vmul.f32 %v1327_v62, %v925_v63  ;;  %v923_v3 = vsel %vm922_vm5, %v1325_v56, %v919_v0 }
 0x273   :  { %v934_v4 = vmul.f32 %v923_v3, %v900_v40 }
 0x274   :  { %v927_v5 = vmul.f32 0.5, %v926_v1 }
 0x275   :  { %v948_v7 = vmul.f32 %v941_v2, %v934_v4 }
 0x276   :  { %v928_v8 = vsub.f32 1.5, %v927_v5 }
 0x277   :  { %v962_v9 = vadd.f32 %v955_v6, %v948_v7 }
 0x278   :  { %v929_v10 = vmul.f32 %v1327_v62, %v928_v8 }
 0x279   :  { %vm964_vm9 = vcmp.gt.f32.partialorder %v962_v9, 0.0  ;;  %v966_v11 = vmul.f32 0.2, %v962_v9 }
 0x27a   :  { %v933_v12 = vsel %vm932_vm8, %v1327_v62, %v929_v10 }
 0x27b   :  { %v935_v13 = vmul.f32 %v933_v12, %v901_v46  ;;  %v968_v14 = vsel %vm964_vm9, %v962_v9, %v966_v11 }
 0x27c   :  { %970 = vst.msk [vmem:[%s1671_s5] sm:$0xff] %vm884_vm1, %v968_v14  ;;  %v960_v16 = vpop.permute.xlu1 %959 }
 0x27d   :  { %v949_v17 = vmul.f32 %v946_v15, %v935_v13 }
 0x27f   :  { %v963_v18 = vadd.f32 %v960_v16, %v949_v17 }
 0x281   :  { %vm965_vm10 = vcmp.gt.f32.partialorder %v963_v18, 0.0  ;;  %v967_v19 = vmul.f32 0.2, %v963_v18 }
 0x283   :  { %v969_v20 = vsel %vm965_vm10, %v963_v18, %v967_v19 }
 0x284   :  { %971 = vst.msk [vmem:[%s1671_s5 + $0x8] sm:$0xff] %vm884_vm1, %v969_v20 }

</bundles_post_ra>
